<compile_context>
chip_gen: v7x
topology: tpu7x:2x2x1
jax: 0.10.0
libtpu: 0.0.40
codegen_flags: <defaults>
</compile_context>

<pallas_src>
import functools

import numpy as np
import jax
import jax.numpy as jnp
from jax.experimental import pallas as pl
from jax.experimental.pallas import tpu as pltpu


# ---------------------------------------------------------------------------
# Parameter setup (glue, plain numpy — mirrors the PyTorch module's __init__)
# ---------------------------------------------------------------------------
def levinson_durbin(r, order):
    a = np.zeros(order + 1)
    a[0] = 1.0
    e = r[0]
    if e == 0:
        raise ValueError("Degenerate autocorrelation: First coefficient is zero.")
    for k in range(1, order + 1):
        lambda_k = -np.dot(a[:k], r[k:0:-1]) / e
        a[1:k + 1] += lambda_k * a[k - 1::-1]
        e *= 1 - lambda_k ** 2
    return a


def compute_all_pole_model(impulse_response, order):
    r = np.correlate(impulse_response, impulse_response, mode="full")
    r = r[len(r) // 2:]
    return levinson_durbin(r, order)


# ---------------------------------------------------------------------------
# Pallas kernel: fused causal FIR on one (TB, TS) tile with a carried halo.
# ---------------------------------------------------------------------------
def _fir_carry_kernel(c_ref, x_ref, o_ref, ext_ref, *, ntaps, halo):
    j = pl.program_id(1)                     # time-tile index (sequential axis)
    tb = x_ref.shape[0]

    @pl.when(j == 0)
    def _():
        # Causal left boundary / fresh batch tile: x[n] = 0 for n < 0.
        ext_ref[:, :halo] = jnp.zeros((tb, halo), dtype=ext_ref.dtype)

    # Stage the current tile to the right of the carried halo: ext = [halo|tile].
    ext_ref[:, halo:] = x_ref[...]
    ext = ext_ref[...]                                     # (TB, halo+TS) f32

    # Mask-free FIR: any roll wrap-around only lands in the halo columns,
    # which are sliced off before the store.
    acc = c_ref[0] * ext                                   # tap k = 0
    for k in range(1, ntaps):                              # small, unrolled
        acc = acc + c_ref[k] * pltpu.roll(ext, shift=k, axis=1)   # XLU shift
    o_ref[...] = acc[:, halo:].astype(o_ref.dtype)

    # Carry this tile's last `halo` samples into the next time tile.
    w = ext_ref.shape[1]
    ext_ref[:, :halo] = ext[:, w - halo:]


# ---------------------------------------------------------------------------
# Wrapper: host-side tap fusion, layout padding, tile selection, pallas_call.
# ---------------------------------------------------------------------------
def _round_up(v, m):
    return ((v + m - 1) // m) * m


def _vmem_capacity_bytes():
    # Generation-aware VMEM budget; conservative fallback = v7x per-TC 64 MiB.
    try:
        cap = int(pltpu.get_tpu_info().vmem_capacity_bytes)
        if cap > 0:
            return cap
    except Exception:
        pass
    return 64 * 1024 * 1024


def iir_filter_rnn(x, b, a, *, tb=None, ts=None):
    """IIRFilterRNN forward.  x: (B, S) f32, b: (Q+1,) f32, a: (P,) f32 -> (B, S)."""
    B, S = x.shape
    Q = int(b.shape[0]) - 1
    P = int(a.shape[0])
    ntaps = P + Q

    # Fuse the two causal FIR stages on host in float64, cast once to f32.
    a64 = np.asarray(a, dtype=np.float64)
    b64 = np.asarray(b, dtype=np.float64)
    c = jnp.asarray(np.convolve(a64[::-1], b64[::-1]).astype(np.float32))  # (P+Q,)

    # Halo (previous samples carried between time tiles), lane-aligned.
    halo = _round_up(max(ntaps - 1, 1), 128)

    # Generation-aware budgets.
    vmem_cap = _vmem_capacity_bytes()
    vmem_limit = max(32 << 20, min(vmem_cap * 3 // 4, 96 << 20))
    block_budget = max(128 << 10, min(2 << 20, vmem_limit // 16))  # ~1-2 MiB blocks

    # ---- time tile ----
    s_pad_full = _round_up(S, 128)
    if ts is None:
        if s_pad_full * 4 * 8 <= block_budget:
            ts = s_pad_full                          # whole (padded) row per block
        else:
            ts = (block_budget // (8 * 4)) // 128 * 128
    ts = _round_up(max(int(ts), halo), 128)          # carry requires ts >= halo
    s_pad = _round_up(S, ts)

    # ---- batch tile ----
    b_pad8 = _round_up(B, 8)
    if tb is None:
        tb = (block_budget // (ts * 4)) // 8 * 8
    tb = max(8, min((int(tb) // 8) * 8, b_pad8))
    # v7x has 2 TensorCores: prefer >= 2 batch tiles whenever the batch allows.
    if b_pad8 >= 16 and b_pad8 // tb < 2:
        tb = max(8, _round_up((b_pad8 + 1) // 2, 8))
    b_pad = _round_up(b_pad8, tb)

    assert halo >= ntaps - 1 and ts >= halo and ts % 128 == 0 and tb % 8 == 0

    xp = x
    if (b_pad, s_pad) != (B, S):
        xp = jnp.pad(x, ((0, b_pad - B), (0, s_pad - S)))

    kernel = functools.partial(_fir_carry_kernel, ntaps=ntaps, halo=halo)
    out = pl.pallas_call(
        kernel,
        out_shape=jax.ShapeDtypeStruct((b_pad, s_pad), x.dtype),
        grid=(b_pad // tb, s_pad // ts),
        in_specs=[
            pl.BlockSpec(memory_space=pltpu.MemorySpace.SMEM),   # fused taps c
            pl.BlockSpec((tb, ts), lambda i, j: (i, j)),         # x tile
        ],
        out_specs=pl.BlockSpec((tb, ts), lambda i, j: (i, j)),
        scratch_shapes=[pltpu.VMEM((tb, halo + ts), jnp.float32)],
        compiler_params=pltpu.CompilerParams(
            dimension_semantics=("parallel", "arbitrary"),
            vmem_limit_bytes=int(vmem_limit)),
    )(c, xp)

    if (b_pad, s_pad) != (B, S):
        out = out[:B, :S]
    return out


# ---------------------------------------------------------------------------
# Pure-numpy reference reproducing torch F.conv1d two-stage semantics exactly
# ---------------------------------------------------------------------------
def reference_forward(x, b, a, P, Q):
    B, S = x.shape
    xp = np.pad(x, ((0, 0), (Q, Q)))
    ff = np.zeros((B, S), dtype=np.float64)
    for n in range(S):
        ff[:, n] = xp[:, n:n + Q + 1] @ b            # cross-correlation
    ffp = np.pad(ff, ((0, 0), (P - 1, P - 1)))
    fb = np.zeros((B, S), dtype=np.float64)
    for n in range(S):
        fb[:, n] = ffp[:, n:n + P] @ a
    return fb


# ---------------------------------------------------------------------------
if __name__ == "__main__":
    # Small, deterministic configuration consistent with the module.
    B = 2
    seq_len = 128
    P_target = 4          # P
    Q = 4                 # Q

    # Deterministic synthetic impulse response of a simple 2-pole system.
    h = np.zeros(seq_len, dtype=np.float64)
    h[0] = 1.0
    h[1] = 0.6
    for n in range(2, seq_len):
        h[n] = 0.6 * h[n - 1] - 0.25 * h[n - 2]

    a_coeffs = compute_all_pole_model(h, P_target)
    a_param = (-a_coeffs[1:]).astype(np.float32)                 # shape (P,)

    key = jax.random.PRNGKey(0)
    kb, kx, kx2 = jax.random.split(key, 3)
    b_param = jax.random.normal(kb, (Q + 1,), dtype=jnp.float32) * 0.1
    x = jax.random.normal(kx, (B, seq_len), dtype=jnp.float32)
    a_j = jnp.asarray(a_param)

    # Main check (module-scale shapes, single tile).
    out = jax.block_until_ready(iir_filter_rnn(x, b_param, a_j))
    ref = reference_forward(np.asarray(x, dtype=np.float64),
                            np.asarray(b_param, dtype=np.float64),
                            np.asarray(a_param, dtype=np.float64), P_target, Q)
    np.testing.assert_allclose(np.asarray(out), ref, rtol=2e-4, atol=2e-5)

    # Multi-tile coverage: B > TB, S not a multiple of 128, carried-halo path.
    x2 = jax.random.normal(kx2, (10, 200), dtype=jnp.float32)
    out2 = jax.block_until_ready(iir_filter_rnn(x2, b_param, a_j, tb=8, ts=128))
    ref2 = reference_forward(np.asarray(x2, dtype=np.float64),
                             np.asarray(b_param, dtype=np.float64),
                             np.asarray(a_param, dtype=np.float64), P_target, Q)
    np.testing.assert_allclose(np.asarray(out2), ref2, rtol=2e-4, atol=2e-5)

    print("KERNEL_OK")
</pallas_src>

<mosaic_0001>
module attributes {stable_mosaic.version = 11 : i64} {
  func.func @_fir_carry_kernel(%arg0: i32, %arg1: i32, %arg2: memref<8xf32, #tpu.memory_space<smem>>, %arg3: memref<8x128xf32, #tpu.memory_space<vmem>>, %arg4: memref<8x128xf32, #tpu.memory_space<vmem>>, %arg5: memref<8x256xf32, #tpu.memory_space<vmem>>) attributes {dimension_semantics = [#tpu.dimension_semantics<parallel>, #tpu.dimension_semantics<arbitrary>], iteration_bounds = array<i64: 1, 1>, scalar_prefetch = 0 : i64, scratch_operands = 1 : i64, tpu.core_type = #tpu.core_type<tc>, window_params = [{transform_indices = @transform_0, window_bounds = array<i64: 8>}, {transform_indices = @transform_1, window_bounds = array<i64: 8, 128>}, {transform_indices = @transform_2, window_bounds = array<i64: 8, 128>}]} {
    %c0_i32 = arith.constant 0 : i32
    %0 = arith.cmpi eq, %arg1, %c0_i32 : i32
    %1 = arith.extui %0 : i1 to i32
    %c0_i32_0 = arith.constant 0 : i32
    %2 = arith.cmpi ne, %1, %c0_i32_0 : i32
    scf.if %2 {
      %cst = arith.constant 0.000000e+00 : f32
      %48 = vector.broadcast %cst : f32 to vector<8x128xf32>
      %c0_10 = arith.constant 0 : index
      %c0_11 = arith.constant 0 : index
      %49 = vector.load %arg5[%c0_10, %c0_11] : memref<8x256xf32, #tpu.memory_space<vmem>>, vector<8x128xf32>
      tpu.vector_store %arg5[%c0_10, %c0_11], %48 {strides = array<i32>} : memref<8x256xf32, #tpu.memory_space<vmem>>, vector<8x128xf32>,
    } else {
    }
    %c0 = arith.constant 0 : index
    %c0_1 = arith.constant 0 : index
    %3 = vector.load %arg3[%c0, %c0_1] : memref<8x128xf32, #tpu.memory_space<vmem>>, vector<8x128xf32>
    %c0_2 = arith.constant 0 : index
    %c128 = arith.constant 128 : index
    %4 = vector.load %arg5[%c0_2, %c128] : memref<8x256xf32, #tpu.memory_space<vmem>>, vector<8x128xf32>
    tpu.vector_store %arg5[%c0_2, %c128], %3 {strides = array<i32>} : memref<8x256xf32, #tpu.memory_space<vmem>>, vector<8x128xf32>,
    %c0_3 = arith.constant 0 : index
    %c0_4 = arith.constant 0 : index
    %5 = vector.load %arg5[%c0_3, %c0_4] : memref<8x256xf32, #tpu.memory_space<vmem>>, vector<8x256xf32>
    %c0_5 = arith.constant 0 : index
    %6 = memref.load %arg2[%c0_5] : memref<8xf32, #tpu.memory_space<smem>>
    %7 = vector.broadcast %6 : f32 to vector<8x256xf32>
    %8 = arith.mulf %7, %5 : vector<8x256xf32>
    %c1 = arith.constant 1 : index
    %9 = memref.load %arg2[%c1] : memref<8xf32, #tpu.memory_space<smem>>
    %c1_i32 = arith.constant 1 : i32
    %10 = tpu.dynamic_rotate %5 by %c1_i32 dim 1 : vector<8x256xf32>, i32 -> vector<8x256xf32>
    %11 = vector.broadcast %9 : f32 to vector<8x256xf32>
    %12 = arith.mulf %11, %10 : vector<8x256xf32>
    %13 = arith.addf %8, %12 : vector<8x256xf32>
    %c2 = arith.constant 2 : index
    %14 = memref.load %arg2[%c2] : memref<8xf32, #tpu.memory_space<smem>>
    %c2_i32 = arith.constant 2 : i32
    %15 = tpu.dynamic_rotate %5 by %c2_i32 dim 1 : vector<8x256xf32>, i32 -> vector<8x256xf32>
    %16 = vector.broadcast %14 : f32 to vector<8x256xf32>
    %17 = arith.mulf %16, %15 : vector<8x256xf32>
    %18 = arith.addf %13, %17 : vector<8x256xf32>
    %c3 = arith.constant 3 : index
    %19 = memref.load %arg2[%c3] : memref<8xf32, #tpu.memory_space<smem>>
    %c3_i32 = arith.constant 3 : i32
    %20 = tpu.dynamic_rotate %5 by %c3_i32 dim 1 : vector<8x256xf32>, i32 -> vector<8x256xf32>
    %21 = vector.broadcast %19 : f32 to vector<8x256xf32>
    %22 = arith.mulf %21, %20 : vector<8x256xf32>
    %23 = arith.addf %18, %22 : vector<8x256xf32>
    %c4 = arith.constant 4 : index
    %24 = memref.load %arg2[%c4] : memref<8xf32, #tpu.memory_space<smem>>
    %c4_i32 = arith.constant 4 : i32
    %25 = tpu.dynamic_rotate %5 by %c4_i32 dim 1 : vector<8x256xf32>, i32 -> vector<8x256xf32>
    %26 = vector.broadcast %24 : f32 to vector<8x256xf32>
    %27 = arith.mulf %26, %25 : vector<8x256xf32>
    %28 = arith.addf %23, %27 : vector<8x256xf32>
    %c5 = arith.constant 5 : index
    %29 = memref.load %arg2[%c5] : memref<8xf32, #tpu.memory_space<smem>>
    %c5_i32 = arith.constant 5 : i32
    %30 = tpu.dynamic_rotate %5 by %c5_i32 dim 1 : vector<8x256xf32>, i32 -> vector<8x256xf32>
    %31 = vector.broadcast %29 : f32 to vector<8x256xf32>
    %32 = arith.mulf %31, %30 : vector<8x256xf32>
    %33 = arith.addf %28, %32 : vector<8x256xf32>
    %c6 = arith.constant 6 : index
    %34 = memref.load %arg2[%c6] : memref<8xf32, #tpu.memory_space<smem>>
    %c6_i32 = arith.constant 6 : i32
    %35 = tpu.dynamic_rotate %5 by %c6_i32 dim 1 : vector<8x256xf32>, i32 -> vector<8x256xf32>
    %36 = vector.broadcast %34 : f32 to vector<8x256xf32>
    %37 = arith.mulf %36, %35 : vector<8x256xf32>
    %38 = arith.addf %33, %37 : vector<8x256xf32>
    %c7 = arith.constant 7 : index
    %39 = memref.load %arg2[%c7] : memref<8xf32, #tpu.memory_space<smem>>
    %c7_i32 = arith.constant 7 : i32
    %40 = tpu.dynamic_rotate %5 by %c7_i32 dim 1 : vector<8x256xf32>, i32 -> vector<8x256xf32>
    %41 = vector.broadcast %39 : f32 to vector<8x256xf32>
    %42 = arith.mulf %41, %40 : vector<8x256xf32>
    %43 = arith.addf %38, %42 : vector<8x256xf32>
    %44 = vector.extract_strided_slice %43 {offsets = [0, 128], sizes = [8, 128], strides = [1, 1]} : vector<8x256xf32> to vector<8x128xf32>
    %c0_6 = arith.constant 0 : index
    %c0_7 = arith.constant 0 : index
    %45 = vector.load %arg4[%c0_6, %c0_7] : memref<8x128xf32, #tpu.memory_space<vmem>>, vector<8x128xf32>
    tpu.vector_store %arg4[%c0_6, %c0_7], %44 {strides = array<i32>} : memref<8x128xf32, #tpu.memory_space<vmem>>, vector<8x128xf32>,
    %46 = vector.extract_strided_slice %5 {offsets = [0, 128], sizes = [8, 128], strides = [1, 1]} : vector<8x256xf32> to vector<8x128xf32>
    %c0_8 = arith.constant 0 : index
    %c0_9 = arith.constant 0 : index
    %47 = vector.load %arg5[%c0_8, %c0_9] : memref<8x256xf32, #tpu.memory_space<vmem>>, vector<8x128xf32>
    tpu.vector_store %arg5[%c0_8, %c0_9], %46 {strides = array<i32>} : memref<8x256xf32, #tpu.memory_space<vmem>>, vector<8x128xf32>,
    return
  }
  func.func @transform_0(%arg0: i32, %arg1: i32) -> i32 {
    %c0_i32 = arith.constant 0 : i32
    %c0_i32_0 = arith.constant 0 : i32
    return %c0_i32 : i32
  }
  func.func @transform_1(%arg0: i32, %arg1: i32) -> (i32, i32) {
    %c0_i32 = arith.constant 0 : i32
    return %arg0, %arg1 : i32, i32
  }
  func.func @transform_2(%arg0: i32, %arg1: i32) -> (i32, i32) {
    %c0_i32 = arith.constant 0 : i32
    return %arg0, %arg1 : i32, i32
  }
}

</mosaic_0001>

<bundles_post_ra>
// kernel: tpu_custom_call.1
= control target key start
LH: loop header
LB: loop body
LE: loop exit
PB: predicated region body
PF: predicated region fallthrough
CT: control target
= control target key end

     0   :  { %7 = vsyncpa [#allocation6], 0  ;;  %s277_s0 = inlined_call_operand.hbm [shape: f32[8], index: 0, kind: input, shape index: {}]   ;;  %s278_s1 = inlined_call_operand.hbm [shape: f32[8,128], index: 1, kind: input, shape index: {}]   ;;  %s279_s2 = inlined_call_operand.hbm [shape: f32[8,128], index: 2, kind: output, shape index: {}]  }
   0x1   :  { %8 = vsyncpa [#allocation4], 0 }
   0x2   :  { %9 = vsyncpa [#allocation5], 0  ;;  %s155_s11 = scalar_lea.hbm %s277_s0, 16 }
   0x3   :  { %p156_p0 = scmp.ne.s32.totalorder %s277_s0, %s155_s11  ;;  %p159_p1 = scmp.lt.u32.totalorder %s155_s11, %s277_s0 }
   0x5   :  { %p161_p2 = pnand %p159_p1, %p156_p0 }
   0x7   :  { %164 = shalt.err (!%p161_p2)
}
   0x8   :  { %s215_s16 = smov [#allocation3]   ;;  %s216_s19 = smov [#allocation7]  }
   0x9   :  { %17 = dma.hbm_to_smem %s277_s0, 16, %s215_s16, [#allocation6]  }
   0xa   :  { %s24_s20 = sshll.u32 %s216_s19, 4  ;;  %s165_s23 = scalar_lea.hbm %s278_s1, 128  ;;  %s25_s20 = int_to_ptr.vmem [resolvable:$true] %s24_s20 }
   0xb   :  { %p166_p3 = scmp.ne.s32.totalorder %s278_s1, %s165_s23  ;;  %p169_p4 = scmp.lt.u32.totalorder %s165_s23, %s278_s1 }
   0xd   :  { %p171_p5 = pnand %p169_p4, %p166_p3 }
   0xf   :  { %174 = shalt.err (!%p171_p5)
}
  0x10   :  { %s175_s28 = scalar_lea.vmem %s25_s20, 128  ;;  %p180_p7 = scmp.lt.s32.totalorder %s25_s20, %s25_s20 }
  0x11   :  { %p176_p6 = scmp.ne.s32.totalorder %s25_s20, %s175_s28  ;;  %p181_p8 = scmp.lt.s32.totalorder %s175_s28, %s175_s28 }
  0x13   :  { %p182_p9 = por %p181_p8, %p180_p7 }
  0x15   :  { %p183_p10 = pnand %p182_p9, %p176_p6 }
  0x17   :  { %186 = shalt.err (!%p183_p10)
}
  0x18   :  { %27 = dma.hbm_to_vmem [thread:$0]  %s278_s1, 128, %s25_s20, [#allocation4]  }
  0x19   :  { %209 = dma.done.wait [#allocation6], 16  }
  0x1a   :  { %210 = vsyncadd [#allocation6], 4294967280 }
  0x1b   :  { %211 = dma.done.wait [#allocation4], 128  }
  0x1c   :  { %212 = vsyncadd [#allocation4], 4294967168 }
  0x1d   :  { %34 = sfence }
  0x1e   :  { %v217_v0 = vmov 0.0   ;;  %s218_s30 = smov 2   ;;  %s219_s3 = smov 1   ;;  %v40_v1 = vld [vmem:[#allocation7] sm:$0xff]  ;;  %v52_v2 = vlaneseq }
  0x1f   :  { %60 = vrot.lane.b32.xlu1 %v217_v0, %s218_s30  ;;  %48 = vrot.lane.b32.xlu0 %v217_v0, %s219_s3  ;;  %s220_s4 = smov 3   ;;  %s221_s5 = smov 4  }
  0x20   :  { %s222_s1 = smov 5   ;;  %s223_s6 = smov 6   ;;  %v53_v3 = vand.u32 127, %v52_v2 }
  0x21   :  { %s224_s7 = smov 7   ;;  %s44_s8 = sld [smem:[#allocation3]] }
  0x22   :  { %s137_s9 = sld [smem:[#allocation3 + $0x1]]  ;;  %vm54_vm0 = vcmp.lt.s32.totalorder %v53_v3, 1  ;;  %s138_s10 = sld [smem:[#allocation3 + $0x2]]  ;;  %vm64_vm1 = vcmp.lt.s32.totalorder %v53_v3, 2  ;;  %vm74_vm2 = vcmp.lt.s32.totalorder %v53_v3, 3  ;;  %vm84_vm3 = vcmp.lt.s32.totalorder %v53_v3, 4 }
  0x23   :  { %62 = vrot.lane.b32.xlu1 %v40_v1, %s218_s30  ;;  %50 = vrot.lane.b32.xlu0 %v40_v1, %s219_s3  ;;  %s139_s11 = sld [smem:[#allocation3 + $0x3]]  ;;  %s140_s12 = sld [smem:[#allocation3 + $0x4]]  ;;  %vm94_vm4 = vcmp.lt.s32.totalorder %v53_v3, 5  ;;  %vm104_vm5 = vcmp.lt.s32.totalorder %v53_v3, 6  ;;  %vm114_vm6 = vcmp.lt.s32.totalorder %v53_v3, 7 }
  0x24   :  { %s141_s13 = sld [smem:[#allocation3 + $0x5]]  ;;  %s142_s14 = sld [smem:[#allocation3 + $0x6]] }
  0x25   :  { %s143_s15 = sld [smem:[#allocation3 + $0x7]]  ;;  %s225_s16 = smov [#allocation8]  }
  0x26   :  { %s127_s17 = sshll.u32 %s225_s16, 4  ;;  %s128_s17 = int_to_ptr.vmem [resolvable:$true] %s127_s17 }
  0x27   :  { %72 = vrot.lane.b32.xlu1 %v40_v1, %s220_s4  ;;  %70 = vrot.lane.b32.xlu0 %v217_v0, %s220_s4  ;;  %v45_v8 = vstv %s44_s8  ;;  %s187_s18 = scalar_lea.vmem %s128_s17, 128  ;;  %p192_p12 = scmp.lt.s32.totalorder %s128_s17, %s128_s17 }
  0x28   :  { %v56_v9 = vstv %s137_s9  ;;  %v46_v11 = vmul.f32 %v45_v8, %v40_v1  ;;  %v66_v15 = vstv %s138_s10  ;;  %p188_p11 = scmp.ne.s32.totalorder %s128_s17, %s187_s18  ;;  %p193_p13 = scmp.lt.s32.totalorder %s187_s18, %s187_s18 }
  0x29   :  { %v76_v20 = vstv %s139_s11  ;;  %v86_v23 = vstv %s140_s12 }
  0x2a   :  { %v96_v29 = vstv %s141_s13  ;;  %v106_v32 = vstv %s142_s14  ;;  %p194_p0 = por %p193_p13, %p192_p12 }
  0x2b   :  { %82 = vrot.lane.b32.xlu1 %v40_v1, %s221_s5  ;;  %80 = vrot.lane.b32.xlu0 %v217_v0, %s221_s5  ;;  %v116_v40 = vstv %s143_s15 }
  0x2c   :  { %p195_p1 = pnand %p194_p0, %p188_p11 }
  0x2f   :  { %92 = vrot.lane.b32.xlu1 %v40_v1, %s222_s1  ;;  %90 = vrot.lane.b32.xlu0 %v217_v0, %s222_s1 }
  0x33   :  { %102 = vrot.lane.b32.xlu1 %v40_v1, %s223_s6  ;;  %100 = vrot.lane.b32.xlu0 %v217_v0, %s223_s6 }
  0x37   :  { %112 = vrot.lane.b32.xlu1 %v40_v1, %s224_s7  ;;  %110 = vrot.lane.b32.xlu0 %v217_v0, %s224_s7 }
  0x91   :  { %v61_v4 = vpop.permute.xlu1 %60  ;;  %v49_v5 = vpop.permute.xlu0 %48 }
  0x95   :  { %v63_v6 = vpop.permute.xlu1 %62  ;;  %v51_v7 = vpop.permute.xlu0 %50 }
  0x96   :  { %v55_v10 = vsel %vm54_vm0, %v49_v5, %v51_v7  ;;  %v65_v16 = vsel %vm64_vm1, %v61_v4, %v63_v6 }
  0x97   :  { %v57_v12 = vmul.f32 %v56_v9, %v55_v10  ;;  %v67_v22 = vmul.f32 %v66_v15, %v65_v16 }
  0x99   :  { %v73_v13 = vpop.permute.xlu1 %72  ;;  %v71_v14 = vpop.permute.xlu0 %70  ;;  %v58_v17 = vadd.f32 %v57_v12, %v46_v11 }
  0x9a   :  { %v75_v21 = vsel %vm74_vm2, %v71_v14, %v73_v13 }
  0x9b   :  { %v68_v25 = vadd.f32 %v67_v22, %v58_v17  ;;  %v77_v26 = vmul.f32 %v76_v20, %v75_v21 }
  0x9d   :  { %v83_v18 = vpop.permute.xlu1 %82  ;;  %v81_v19 = vpop.permute.xlu0 %80  ;;  %v78_v33 = vadd.f32 %v77_v26, %v68_v25 }
  0x9e   :  { %v85_v24 = vsel %vm84_vm3, %v81_v19, %v83_v18 }
  0x9f   :  { %v87_v31 = vmul.f32 %v86_v23, %v85_v24 }
  0xa1   :  { %v93_v27 = vpop.permute.xlu1 %92  ;;  %v91_v28 = vpop.permute.xlu0 %90  ;;  %v88_v38 = vadd.f32 %v87_v31, %v78_v33 }
  0xa2   :  { %v95_v30 = vsel %vm94_vm4, %v91_v28, %v93_v27 }
  0xa3   :  { %v97_v34 = vmul.f32 %v96_v29, %v95_v30 }
  0xa5   :  { %v103_v35 = vpop.permute.xlu1 %102  ;;  %v101_v36 = vpop.permute.xlu0 %100  ;;  %v98_v41 = vadd.f32 %v97_v34, %v88_v38 }
  0xa6   :  { %v105_v37 = vsel %vm104_vm5, %v101_v36, %v103_v35 }
  0xa7   :  { %v107_v39 = vmul.f32 %v106_v32, %v105_v37 }
  0xa9   :  { %v113_v42 = vpop.permute.xlu1 %112  ;;  %v111_v43 = vpop.permute.xlu0 %110  ;;  %v108_v46 = vadd.f32 %v107_v39, %v98_v41 }
  0xaa   :  { %v115_v44 = vsel %vm114_vm6, %v111_v43, %v113_v42 }
  0xab   :  { %v117_v45 = vmul.f32 %v116_v40, %v115_v44 }
  0xad   :  { %v118_v47 = vadd.f32 %v117_v45, %v108_v46 }
  0xaf   :  { %119 = vst [vmem:[#allocation8] sm:$0xff] %v118_v47 }
  0xb0   :  { %198 = shalt.err (!%p195_p1)
}
  0xb1   :  { %s199_s21 = scalar_lea.hbm %s279_s2, 128 }
  0xb2   :  { %p200_p2 = scmp.ne.s32.totalorder %s279_s2, %s199_s21  ;;  %p203_p3 = scmp.lt.u32.totalorder %s199_s21, %s279_s2 }
  0xb4   :  { %p205_p4 = pnand %p203_p3, %p200_p2 }
  0xb6   :  { %208 = shalt.err (!%p205_p4)
}
  0xb7   :  { %130 = dma.vmem_to_hbm [thread:$0]  %s128_s17, 128, %s279_s2, [#allocation5]  }
  0xb8   :  { %213 = dma.done.wait [#allocation5], 128  }
  0xb9   :  { %214 = vsyncadd [#allocation5], 4294967168 }
  0xba   :  { %134 = vsyncpa [#allocation4], 1 }
  0xbb   :  { %135 = vsyncpa [#allocation5], 1 }
  0xbc   :  { %136 = vsyncpa [#allocation6], 1 }

</bundles_post_ra>
